<compile_context>
chip_gen: v7x
topology: tpu7x:2x2x1
jax: 0.10.0
libtpu: 0.0.40
codegen_flags: <defaults>
</compile_context>

<pallas_src>
import functools

import jax
import jax.numpy as jnp
from jax.experimental import pallas as pl
from jax.experimental.pallas import tpu as pltpu


LANE = 128       # lane width: output dims (H1P, H2P) are padded to this
K_PACK = 16      # bf16 sublane packing: contraction dims are padded to this


def _round_up(v, m):
    return (v + m - 1) // m * m


# ---------------------------------------------------------------------------
# Kernel
# ---------------------------------------------------------------------------
def _dendro_kernel(x_ref, p_ref, w1_ref, w2_ref, o_ref, *, fk, hk, num_edges):
    """One batch tile of the fused DendroMatrixNN forward.

    x_ref  : (TB, FK)          bf16  zero-padded feature rows
    p_ref  : (TB, E)           f32   per-sample path weights (path_mat[:, idx].T)
    w1_ref : ((E+1)*FK, H1P)   bf16  [root_lin1 ; d1_0 ; ... ; d1_{E-1}]
    w2_ref : ((E+1)*HK, H2P)   bf16  [root_lin2 ; d2_0 ; ... ; d2_{E-1}]
    o_ref  : (TB, H2P)         f32
    """
    x = x_ref[...]                                               # (TB, FK) bf16
    p = p_ref[...]                                               # (TB, E)  f32

    # ---- layer 1: root + unrolled per-edge delta accumulation (f32) --------
    acc1 = jnp.dot(x, w1_ref[0:fk, :], preferred_element_type=jnp.float32)
    for e in range(num_edges):
        d = jnp.dot(x, w1_ref[(e + 1) * fk:(e + 2) * fk, :],
                    preferred_element_type=jnp.float32)
        acc1 = acc1 + p[:, e:e + 1] * d                          # f32 post-matmul scale
    hid = jnp.maximum(acc1, 0.0)                                 # (TB, H1P) f32, ReLU

    # ---- layer 2: same structure on the hidden activations ------------------
    # Only the first HK lanes of hid are meaningful (the rest are zero padding);
    # slice them so the layer-2 contraction runs over K = HK, not 128.
    hid_k = hid[:, :hk].astype(jnp.bfloat16)                     # (TB, HK) bf16
    acc2 = jnp.dot(hid_k, w2_ref[0:hk, :], preferred_element_type=jnp.float32)
    for e in range(num_edges):
        d = jnp.dot(hid_k, w2_ref[(e + 1) * hk:(e + 2) * hk, :],
                    preferred_element_type=jnp.float32)
        acc2 = acc2 + p[:, e:e + 1] * d
    o_ref[...] = acc2


# ---------------------------------------------------------------------------
# One-time parameter preparation (outside the jitted forward path)
# ---------------------------------------------------------------------------
def prepare_dendro_params(root_lin1, root_lin2, delta_mat1, delta_mat2):
    """Fold root + per-edge delta weights into sublane/lane-padded bf16 slabs.

    Returns:
      w1_slab : ((E+1)*FK, H1P) bf16  block 0 = root_lin1, block e+1 = d1_e.T
      w2_slab : ((E+1)*HK, H2P) bf16  block 0 = root_lin2, block e+1 = d2_e.T
    with FK = round_up(F, 16), HK = round_up(H1, 16) (contraction dims packed
    to the bf16 sublane multiple) and H1P/H2P = round_up(H1/H2, 128).
    """
    F, H1 = root_lin1.shape
    H2 = root_lin2.shape[1]
    E = delta_mat1.shape[2]
    FK = _round_up(F, K_PACK)
    HK = _round_up(H1, K_PACK)
    H1P = _round_up(H1, LANE)
    H2P = _round_up(H2, LANE)

    # Layer 1 blocks: block 0 = root_lin1, block e+1 = delta_mat1[:, :, e].T (F, H1)
    d1 = jnp.transpose(delta_mat1.astype(jnp.float32), (2, 1, 0))        # (E, F, H1)
    w1 = jnp.concatenate([root_lin1.astype(jnp.float32)[None], d1], 0)   # (E+1, F, H1)
    w1 = jnp.pad(w1, ((0, 0), (0, FK - F), (0, H1P - H1)))
    w1_slab = w1.reshape((E + 1) * FK, H1P).astype(jnp.bfloat16)

    # Layer 2 blocks: block 0 = root_lin2, block e+1 = delta_mat2[:, :, e].T (H1, H2)
    d2 = jnp.transpose(delta_mat2.astype(jnp.float32), (2, 1, 0))        # (E, H1, H2)
    w2 = jnp.concatenate([root_lin2.astype(jnp.float32)[None], d2], 0)   # (E+1, H1, H2)
    w2 = jnp.pad(w2, ((0, 0), (0, HK - H1), (0, H2P - H2)))
    w2_slab = w2.reshape((E + 1) * HK, H2P).astype(jnp.bfloat16)
    return w1_slab, w2_slab


# ---------------------------------------------------------------------------
# Forward
# ---------------------------------------------------------------------------
def _choose_batch_tile(B):
    # Adaptive batch tile (multiple of 16 for bf16 sublane packing):
    #   * small batches  -> exact tile, no discarded padded-row matmuls
    #   * >= 256 rows    -> TB=128 so the grid has >= 2 steps (both v7x TCs busy)
    #   * >= 512 rows    -> TB=256 fills the 256-wide MXU M dim on v6e/v7x
    b16 = _round_up(B, 16)
    if b16 >= 512:
        return 256
    if b16 >= 256:
        return 128
    return b16


@functools.partial(jax.jit, static_argnames=("h2",))
def dendro_matrix_nn_forward(x, node_idx, path_mat, w1_slab, w2_slab, *, h2):
    B, F = x.shape
    E = path_mat.shape[0]
    E1 = E + 1
    FK = w1_slab.shape[0] // E1
    HK = w2_slab.shape[0] // E1
    H1P = w1_slab.shape[1]
    H2P = w2_slab.shape[1]

    TB = _choose_batch_tile(B)
    B_pad = _round_up(B, TB)

    # Per-sample path gather hoisted out of the kernel (tiny (B, E) array; XLA
    # fuses it with the padding).  Padded batch rows get p = 0 (root-only) and
    # are sliced off after the kernel.
    p = jnp.take(path_mat, node_idx.astype(jnp.int32), axis=1).T.astype(jnp.float32)

    x_p = jnp.zeros((B_pad, FK), jnp.bfloat16).at[:B, :F].set(x.astype(jnp.bfloat16))
    p_p = jnp.zeros((B_pad, E), jnp.float32).at[:B, :].set(p)

    kernel = functools.partial(_dendro_kernel, fk=FK, hk=HK, num_edges=E)
    const_mode = pl.Buffered(1)   # grid-invariant slabs: no double-buffering

    grid = (B_pad // TB,)
    out = pl.pallas_call(
        kernel,
        out_shape=jax.ShapeDtypeStruct((B_pad, H2P), jnp.float32),
        grid_spec=pl.GridSpec(
            grid=grid,
            in_specs=[
                pl.BlockSpec((TB, FK), lambda i: (i, 0)),
                pl.BlockSpec((TB, E), lambda i: (i, 0)),
                pl.BlockSpec((E1 * FK, H1P), lambda i: (0, 0),
                             pipeline_mode=const_mode),
                pl.BlockSpec((E1 * HK, H2P), lambda i: (0, 0),
                             pipeline_mode=const_mode),
            ],
            out_specs=pl.BlockSpec((TB, H2P), lambda i: (i, 0)),
        ),
        compiler_params=pltpu.CompilerParams(
            dimension_semantics=("parallel",)),
        # TODO(synk): when (E+1)*max(FK,HK)*max(H1P,H2P) grows toward tens of
        # MiB (F,H1 ~ 1k, E ~ 32), add a trailing "arbitrary" grid axis that
        # streams K-chunks of w1/w2 with an f32 VMEM scratch accumulator and
        # pl.when init/finalize, and raise vmem_limit_bytes; required first on
        # v7x (64 MiB per-TC VMEM, per-core slab replication under megacore).
    )(x_p, p_p, w1_slab, w2_slab)

    # TODO(synk): emit bf16 output (out_shape dtype) if downstream tolerates it,
    # halving the HBM writeback.
    out = out[:B, :h2]            # drop batch + lane padding
    return jnp.squeeze(out)       # matches torch.squeeze on the final result


# ---------------------------------------------------------------------------
# Pure-JAX reference (float32) for the intended forward semantics
# ---------------------------------------------------------------------------
def _reference(x, node_idx, path_mat, root_lin1, root_lin2, delta_mat1, delta_mat2):
    p = jnp.take(path_mat, node_idx, axis=1)                               # (E, B)
    w1 = root_lin1[None] + jnp.einsum('hfe,eb->bfh', delta_mat1, p)        # (B, F, H1)
    hid = jax.nn.relu(jnp.einsum('bf,bfh->bh', x, w1))                     # (B, H1)
    w2 = root_lin2[None] + jnp.einsum('jhe,eb->bhj', delta_mat2, p)        # (B, H1, H2)
    out = jnp.einsum('bh,bhj->bj', hid, w2)                                # (B, H2)
    return jnp.squeeze(out)


if __name__ == "__main__":
    # Small deterministic shapes consistent with the module.
    B = 8            # batch (samples)
    F = 16           # num_features
    H1, H2 = 32, 8   # layer_sizes
    E = 8            # num_edges (rows of path_mat)
    N = 10           # number of tree nodes (columns of path_mat)

    key = jax.random.PRNGKey(0)
    k1, k2, k3, k4, k5, k6, k7 = jax.random.split(key, 7)

    path_mat = (jax.random.uniform(k1, (E, N)) < 0.5).astype(jnp.float32)
    root_lin1 = 0.01 * jax.random.normal(k2, (F, H1), dtype=jnp.float32)
    root_lin2 = 0.01 * jax.random.normal(k3, (H1, H2), dtype=jnp.float32)
    # init_deltas=True behaviour (otherwise deltas are zeros and contribute nothing)
    delta_mat1 = 0.01 * jax.random.normal(k4, (H1, F, E), dtype=jnp.float32)
    delta_mat2 = 0.01 * jax.random.normal(k5, (H2, H1, E), dtype=jnp.float32)

    x = jax.random.normal(k6, (B, F), dtype=jnp.float32)
    node_idx = jax.random.randint(k7, (B,), 0, N, dtype=jnp.int32)

    # One-time weight prep (pre-folded, packed, bf16) -- outside the forward.
    w1_slab, w2_slab = prepare_dendro_params(root_lin1, root_lin2,
                                             delta_mat1, delta_mat2)
    w1_slab, w2_slab = jax.block_until_ready((w1_slab, w2_slab))

    out = dendro_matrix_nn_forward(x, node_idx, path_mat, w1_slab, w2_slab, h2=H2)
    out = jax.block_until_ready(out)

    ref = _reference(x, node_idx, path_mat,
                     root_lin1, root_lin2, delta_mat1, delta_mat2)
    assert out.shape == ref.shape, (out.shape, ref.shape)
    # bf16 inputs / f32 accumulation -> bf16-appropriate tolerance.
    assert jnp.allclose(out, ref, rtol=3e-2, atol=1e-3), (
        "mismatch vs reference", float(jnp.max(jnp.abs(out - ref))))

    print("KERNEL_OK")
</pallas_src>

<mosaic_0001>
module attributes {stable_mosaic.version = 11 : i64} {
  func.func @_dendro_kernel(%arg0: i32, %arg1: memref<16x16xbf16, #tpu.memory_space<vmem>>, %arg2: memref<16x8xf32, #tpu.memory_space<vmem>>, %arg3: memref<144x128xbf16, #tpu.memory_space<vmem>>, %arg4: memref<288x128xbf16, #tpu.memory_space<vmem>>, %arg5: memref<16x128xf32, #tpu.memory_space<vmem>>) attributes {dimension_semantics = [#tpu.dimension_semantics<parallel>], iteration_bounds = array<i64: 1>, scalar_prefetch = 0 : i64, scratch_operands = 0 : i64, tpu.core_type = #tpu.core_type<tc>, window_params = [{transform_indices = @transform_0, window_bounds = array<i64: 16, 16>}, {transform_indices = @transform_1, window_bounds = array<i64: 16, 8>}, {pipeline_mode = #tpu.pipeline_mode<synchronous>, transform_indices = @transform_2, window_bounds = array<i64: 144, 128>}, {pipeline_mode = #tpu.pipeline_mode<synchronous>, transform_indices = @transform_3, window_bounds = array<i64: 288, 128>}, {transform_indices = @transform_4, window_bounds = array<i64: 16, 128>}]} {
    %c0 = arith.constant 0 : index
    %c0_0 = arith.constant 0 : index
    %0 = vector.load %arg1[%c0, %c0_0] : memref<16x16xbf16, #tpu.memory_space<vmem>>, vector<16x16xbf16>
    %c0_1 = arith.constant 0 : index
    %c0_2 = arith.constant 0 : index
    %1 = vector.load %arg2[%c0_1, %c0_2] : memref<16x8xf32, #tpu.memory_space<vmem>>, vector<16x8xf32>
    %c0_3 = arith.constant 0 : index
    %c0_4 = arith.constant 0 : index
    %2 = vector.load %arg3[%c0_3, %c0_4] : memref<144x128xbf16, #tpu.memory_space<vmem>>, vector<16x128xbf16>
    %cst = arith.constant dense<0.000000e+00> : vector<16x128xf32>
    %3 = tpu.matmul %0, %2, %cst {dimension_numbers = #tpu.dot_dimension_numbers<[1], [0], [0], [1], [0, 0, 1, 1], [], []>} : vector<16x16xbf16>, vector<16x128xbf16>, vector<16x128xf32> -> vector<16x128xf32>
    %c16 = arith.constant 16 : index
    %c0_5 = arith.constant 0 : index
    %4 = vector.load %arg3[%c16, %c0_5] : memref<144x128xbf16, #tpu.memory_space<vmem>>, vector<16x128xbf16>
    %cst_6 = arith.constant dense<0.000000e+00> : vector<16x128xf32>
    %5 = tpu.matmul %0, %4, %cst_6 {dimension_numbers = #tpu.dot_dimension_numbers<[1], [0], [0], [1], [0, 0, 1, 1], [], []>} : vector<16x16xbf16>, vector<16x128xbf16>, vector<16x128xf32> -> vector<16x128xf32>
    %6 = vector.extract_strided_slice %1 {offsets = [0, 0], sizes = [16, 1], strides = [1, 1]} : vector<16x8xf32> to vector<16x1xf32>
    %7 = vector.broadcast %6 : vector<16x1xf32> to vector<16x128xf32>
    %8 = arith.mulf %7, %5 : vector<16x128xf32>
    %9 = arith.addf %3, %8 : vector<16x128xf32>
    %c32 = arith.constant 32 : index
    %c0_7 = arith.constant 0 : index
    %10 = vector.load %arg3[%c32, %c0_7] : memref<144x128xbf16, #tpu.memory_space<vmem>>, vector<16x128xbf16>
    %cst_8 = arith.constant dense<0.000000e+00> : vector<16x128xf32>
    %11 = tpu.matmul %0, %10, %cst_8 {dimension_numbers = #tpu.dot_dimension_numbers<[1], [0], [0], [1], [0, 0, 1, 1], [], []>} : vector<16x16xbf16>, vector<16x128xbf16>, vector<16x128xf32> -> vector<16x128xf32>
    %12 = vector.extract_strided_slice %1 {offsets = [0, 1], sizes = [16, 1], strides = [1, 1]} : vector<16x8xf32> to vector<16x1xf32>
    %13 = vector.broadcast %12 : vector<16x1xf32> to vector<16x128xf32>
    %14 = arith.mulf %13, %11 : vector<16x128xf32>
    %15 = arith.addf %9, %14 : vector<16x128xf32>
    %c48 = arith.constant 48 : index
    %c0_9 = arith.constant 0 : index
    %16 = vector.load %arg3[%c48, %c0_9] : memref<144x128xbf16, #tpu.memory_space<vmem>>, vector<16x128xbf16>
    %cst_10 = arith.constant dense<0.000000e+00> : vector<16x128xf32>
    %17 = tpu.matmul %0, %16, %cst_10 {dimension_numbers = #tpu.dot_dimension_numbers<[1], [0], [0], [1], [0, 0, 1, 1], [], []>} : vector<16x16xbf16>, vector<16x128xbf16>, vector<16x128xf32> -> vector<16x128xf32>
    %18 = vector.extract_strided_slice %1 {offsets = [0, 2], sizes = [16, 1], strides = [1, 1]} : vector<16x8xf32> to vector<16x1xf32>
    %19 = vector.broadcast %18 : vector<16x1xf32> to vector<16x128xf32>
    %20 = arith.mulf %19, %17 : vector<16x128xf32>
    %21 = arith.addf %15, %20 : vector<16x128xf32>
    %c64 = arith.constant 64 : index
    %c0_11 = arith.constant 0 : index
    %22 = vector.load %arg3[%c64, %c0_11] : memref<144x128xbf16, #tpu.memory_space<vmem>>, vector<16x128xbf16>
    %cst_12 = arith.constant dense<0.000000e+00> : vector<16x128xf32>
    %23 = tpu.matmul %0, %22, %cst_12 {dimension_numbers = #tpu.dot_dimension_numbers<[1], [0], [0], [1], [0, 0, 1, 1], [], []>} : vector<16x16xbf16>, vector<16x128xbf16>, vector<16x128xf32> -> vector<16x128xf32>
    %24 = vector.extract_strided_slice %1 {offsets = [0, 3], sizes = [16, 1], strides = [1, 1]} : vector<16x8xf32> to vector<16x1xf32>
    %25 = vector.broadcast %24 : vector<16x1xf32> to vector<16x128xf32>
    %26 = arith.mulf %25, %23 : vector<16x128xf32>
    %27 = arith.addf %21, %26 : vector<16x128xf32>
    %c80 = arith.constant 80 : index
    %c0_13 = arith.constant 0 : index
    %28 = vector.load %arg3[%c80, %c0_13] : memref<144x128xbf16, #tpu.memory_space<vmem>>, vector<16x128xbf16>
    %cst_14 = arith.constant dense<0.000000e+00> : vector<16x128xf32>
    %29 = tpu.matmul %0, %28, %cst_14 {dimension_numbers = #tpu.dot_dimension_numbers<[1], [0], [0], [1], [0, 0, 1, 1], [], []>} : vector<16x16xbf16>, vector<16x128xbf16>, vector<16x128xf32> -> vector<16x128xf32>
    %30 = vector.extract_strided_slice %1 {offsets = [0, 4], sizes = [16, 1], strides = [1, 1]} : vector<16x8xf32> to vector<16x1xf32>
    %31 = vector.broadcast %30 : vector<16x1xf32> to vector<16x128xf32>
    %32 = arith.mulf %31, %29 : vector<16x128xf32>
    %33 = arith.addf %27, %32 : vector<16x128xf32>
    %c96 = arith.constant 96 : index
    %c0_15 = arith.constant 0 : index
    %34 = vector.load %arg3[%c96, %c0_15] : memref<144x128xbf16, #tpu.memory_space<vmem>>, vector<16x128xbf16>
    %cst_16 = arith.constant dense<0.000000e+00> : vector<16x128xf32>
    %35 = tpu.matmul %0, %34, %cst_16 {dimension_numbers = #tpu.dot_dimension_numbers<[1], [0], [0], [1], [0, 0, 1, 1], [], []>} : vector<16x16xbf16>, vector<16x128xbf16>, vector<16x128xf32> -> vector<16x128xf32>
    %36 = vector.extract_strided_slice %1 {offsets = [0, 5], sizes = [16, 1], strides = [1, 1]} : vector<16x8xf32> to vector<16x1xf32>
    %37 = vector.broadcast %36 : vector<16x1xf32> to vector<16x128xf32>
    %38 = arith.mulf %37, %35 : vector<16x128xf32>
    %39 = arith.addf %33, %38 : vector<16x128xf32>
    %c112 = arith.constant 112 : index
    %c0_17 = arith.constant 0 : index
    %40 = vector.load %arg3[%c112, %c0_17] : memref<144x128xbf16, #tpu.memory_space<vmem>>, vector<16x128xbf16>
    %cst_18 = arith.constant dense<0.000000e+00> : vector<16x128xf32>
    %41 = tpu.matmul %0, %40, %cst_18 {dimension_numbers = #tpu.dot_dimension_numbers<[1], [0], [0], [1], [0, 0, 1, 1], [], []>} : vector<16x16xbf16>, vector<16x128xbf16>, vector<16x128xf32> -> vector<16x128xf32>
    %42 = vector.extract_strided_slice %1 {offsets = [0, 6], sizes = [16, 1], strides = [1, 1]} : vector<16x8xf32> to vector<16x1xf32>
    %43 = vector.broadcast %42 : vector<16x1xf32> to vector<16x128xf32>
    %44 = arith.mulf %43, %41 : vector<16x128xf32>
    %45 = arith.addf %39, %44 : vector<16x128xf32>
    %c128 = arith.constant 128 : index
    %c0_19 = arith.constant 0 : index
    %46 = vector.load %arg3[%c128, %c0_19] : memref<144x128xbf16, #tpu.memory_space<vmem>>, vector<16x128xbf16>
    %cst_20 = arith.constant dense<0.000000e+00> : vector<16x128xf32>
    %47 = tpu.matmul %0, %46, %cst_20 {dimension_numbers = #tpu.dot_dimension_numbers<[1], [0], [0], [1], [0, 0, 1, 1], [], []>} : vector<16x16xbf16>, vector<16x128xbf16>, vector<16x128xf32> -> vector<16x128xf32>
    %48 = vector.extract_strided_slice %1 {offsets = [0, 7], sizes = [16, 1], strides = [1, 1]} : vector<16x8xf32> to vector<16x1xf32>
    %49 = vector.broadcast %48 : vector<16x1xf32> to vector<16x128xf32>
    %50 = arith.mulf %49, %47 : vector<16x128xf32>
    %51 = arith.addf %45, %50 : vector<16x128xf32>
    %cst_21 = arith.constant 0.000000e+00 : f32
    %52 = vector.broadcast %cst_21 : f32 to vector<16x128xf32>
    %53 = arith.maximumf %51, %52 : vector<16x128xf32>
    %54 = vector.extract_strided_slice %53 {offsets = [0, 0], sizes = [16, 32], strides = [1, 1]} : vector<16x128xf32> to vector<16x32xf32>
    %55 = arith.truncf %54 : vector<16x32xf32> to vector<16x32xbf16>
    %c0_22 = arith.constant 0 : index
    %c0_23 = arith.constant 0 : index
    %56 = vector.load %arg4[%c0_22, %c0_23] : memref<288x128xbf16, #tpu.memory_space<vmem>>, vector<32x128xbf16>
    %cst_24 = arith.constant dense<0.000000e+00> : vector<16x128xf32>
    %57 = tpu.matmul %55, %56, %cst_24 {dimension_numbers = #tpu.dot_dimension_numbers<[1], [0], [0], [1], [0, 0, 1, 1], [], []>} : vector<16x32xbf16>, vector<32x128xbf16>, vector<16x128xf32> -> vector<16x128xf32>
    %c32_25 = arith.constant 32 : index
    %c0_26 = arith.constant 0 : index
    %58 = vector.load %arg4[%c32_25, %c0_26] : memref<288x128xbf16, #tpu.memory_space<vmem>>, vector<32x128xbf16>
    %cst_27 = arith.constant dense<0.000000e+00> : vector<16x128xf32>
    %59 = tpu.matmul %55, %58, %cst_27 {dimension_numbers = #tpu.dot_dimension_numbers<[1], [0], [0], [1], [0, 0, 1, 1], [], []>} : vector<16x32xbf16>, vector<32x128xbf16>, vector<16x128xf32> -> vector<16x128xf32>
    %60 = vector.extract_strided_slice %1 {offsets = [0, 0], sizes = [16, 1], strides = [1, 1]} : vector<16x8xf32> to vector<16x1xf32>
    %61 = vector.broadcast %60 : vector<16x1xf32> to vector<16x128xf32>
    %62 = arith.mulf %61, %59 : vector<16x128xf32>
    %63 = arith.addf %57, %62 : vector<16x128xf32>
    %c64_28 = arith.constant 64 : index
    %c0_29 = arith.constant 0 : index
    %64 = vector.load %arg4[%c64_28, %c0_29] : memref<288x128xbf16, #tpu.memory_space<vmem>>, vector<32x128xbf16>
    %cst_30 = arith.constant dense<0.000000e+00> : vector<16x128xf32>
    %65 = tpu.matmul %55, %64, %cst_30 {dimension_numbers = #tpu.dot_dimension_numbers<[1], [0], [0], [1], [0, 0, 1, 1], [], []>} : vector<16x32xbf16>, vector<32x128xbf16>, vector<16x128xf32> -> vector<16x128xf32>
    %66 = vector.extract_strided_slice %1 {offsets = [0, 1], sizes = [16, 1], strides = [1, 1]} : vector<16x8xf32> to vector<16x1xf32>
    %67 = vector.broadcast %66 : vector<16x1xf32> to vector<16x128xf32>
    %68 = arith.mulf %67, %65 : vector<16x128xf32>
    %69 = arith.addf %63, %68 : vector<16x128xf32>
    %c96_31 = arith.constant 96 : index
    %c0_32 = arith.constant 0 : index
    %70 = vector.load %arg4[%c96_31, %c0_32] : memref<288x128xbf16, #tpu.memory_space<vmem>>, vector<32x128xbf16>
    %cst_33 = arith.constant dense<0.000000e+00> : vector<16x128xf32>
    %71 = tpu.matmul %55, %70, %cst_33 {dimension_numbers = #tpu.dot_dimension_numbers<[1], [0], [0], [1], [0, 0, 1, 1], [], []>} : vector<16x32xbf16>, vector<32x128xbf16>, vector<16x128xf32> -> vector<16x128xf32>
    %72 = vector.extract_strided_slice %1 {offsets = [0, 2], sizes = [16, 1], strides = [1, 1]} : vector<16x8xf32> to vector<16x1xf32>
    %73 = vector.broadcast %72 : vector<16x1xf32> to vector<16x128xf32>
    %74 = arith.mulf %73, %71 : vector<16x128xf32>
    %75 = arith.addf %69, %74 : vector<16x128xf32>
    %c128_34 = arith.constant 128 : index
    %c0_35 = arith.constant 0 : index
    %76 = vector.load %arg4[%c128_34, %c0_35] : memref<288x128xbf16, #tpu.memory_space<vmem>>, vector<32x128xbf16>
    %cst_36 = arith.constant dense<0.000000e+00> : vector<16x128xf32>
    %77 = tpu.matmul %55, %76, %cst_36 {dimension_numbers = #tpu.dot_dimension_numbers<[1], [0], [0], [1], [0, 0, 1, 1], [], []>} : vector<16x32xbf16>, vector<32x128xbf16>, vector<16x128xf32> -> vector<16x128xf32>
    %78 = vector.extract_strided_slice %1 {offsets = [0, 3], sizes = [16, 1], strides = [1, 1]} : vector<16x8xf32> to vector<16x1xf32>
    %79 = vector.broadcast %78 : vector<16x1xf32> to vector<16x128xf32>
    %80 = arith.mulf %79, %77 : vector<16x128xf32>
    %81 = arith.addf %75, %80 : vector<16x128xf32>
    %c160 = arith.constant 160 : index
    %c0_37 = arith.constant 0 : index
    %82 = vector.load %arg4[%c160, %c0_37] : memref<288x128xbf16, #tpu.memory_space<vmem>>, vector<32x128xbf16>
    %cst_38 = arith.constant dense<0.000000e+00> : vector<16x128xf32>
    %83 = tpu.matmul %55, %82, %cst_38 {dimension_numbers = #tpu.dot_dimension_numbers<[1], [0], [0], [1], [0, 0, 1, 1], [], []>} : vector<16x32xbf16>, vector<32x128xbf16>, vector<16x128xf32> -> vector<16x128xf32>
    %84 = vector.extract_strided_slice %1 {offsets = [0, 4], sizes = [16, 1], strides = [1, 1]} : vector<16x8xf32> to vector<16x1xf32>
    %85 = vector.broadcast %84 : vector<16x1xf32> to vector<16x128xf32>
    %86 = arith.mulf %85, %83 : vector<16x128xf32>
    %87 = arith.addf %81, %86 : vector<16x128xf32>
    %c192 = arith.constant 192 : index
    %c0_39 = arith.constant 0 : index
    %88 = vector.load %arg4[%c192, %c0_39] : memref<288x128xbf16, #tpu.memory_space<vmem>>, vector<32x128xbf16>
    %cst_40 = arith.constant dense<0.000000e+00> : vector<16x128xf32>
    %89 = tpu.matmul %55, %88, %cst_40 {dimension_numbers = #tpu.dot_dimension_numbers<[1], [0], [0], [1], [0, 0, 1, 1], [], []>} : vector<16x32xbf16>, vector<32x128xbf16>, vector<16x128xf32> -> vector<16x128xf32>
    %90 = vector.extract_strided_slice %1 {offsets = [0, 5], sizes = [16, 1], strides = [1, 1]} : vector<16x8xf32> to vector<16x1xf32>
    %91 = vector.broadcast %90 : vector<16x1xf32> to vector<16x128xf32>
    %92 = arith.mulf %91, %89 : vector<16x128xf32>
    %93 = arith.addf %87, %92 : vector<16x128xf32>
    %c224 = arith.constant 224 : index
    %c0_41 = arith.constant 0 : index
    %94 = vector.load %arg4[%c224, %c0_41] : memref<288x128xbf16, #tpu.memory_space<vmem>>, vector<32x128xbf16>
    %cst_42 = arith.constant dense<0.000000e+00> : vector<16x128xf32>
    %95 = tpu.matmul %55, %94, %cst_42 {dimension_numbers = #tpu.dot_dimension_numbers<[1], [0], [0], [1], [0, 0, 1, 1], [], []>} : vector<16x32xbf16>, vector<32x128xbf16>, vector<16x128xf32> -> vector<16x128xf32>
    %96 = vector.extract_strided_slice %1 {offsets = [0, 6], sizes = [16, 1], strides = [1, 1]} : vector<16x8xf32> to vector<16x1xf32>
    %97 = vector.broadcast %96 : vector<16x1xf32> to vector<16x128xf32>
    %98 = arith.mulf %97, %95 : vector<16x128xf32>
    %99 = arith.addf %93, %98 : vector<16x128xf32>
    %c256 = arith.constant 256 : index
    %c0_43 = arith.constant 0 : index
    %100 = vector.load %arg4[%c256, %c0_43] : memref<288x128xbf16, #tpu.memory_space<vmem>>, vector<32x128xbf16>
    %cst_44 = arith.constant dense<0.000000e+00> : vector<16x128xf32>
    %101 = tpu.matmul %55, %100, %cst_44 {dimension_numbers = #tpu.dot_dimension_numbers<[1], [0], [0], [1], [0, 0, 1, 1], [], []>} : vector<16x32xbf16>, vector<32x128xbf16>, vector<16x128xf32> -> vector<16x128xf32>
    %102 = vector.extract_strided_slice %1 {offsets = [0, 7], sizes = [16, 1], strides = [1, 1]} : vector<16x8xf32> to vector<16x1xf32>
    %103 = vector.broadcast %102 : vector<16x1xf32> to vector<16x128xf32>
    %104 = arith.mulf %103, %101 : vector<16x128xf32>
    %105 = arith.addf %99, %104 : vector<16x128xf32>
    %c0_45 = arith.constant 0 : index
    %c0_46 = arith.constant 0 : index
    %106 = vector.load %arg5[%c0_45, %c0_46] : memref<16x128xf32, #tpu.memory_space<vmem>>, vector<16x128xf32>
    tpu.vector_store %arg5[%c0_45, %c0_46], %105 {strides = array<i32>} : memref<16x128xf32, #tpu.memory_space<vmem>>, vector<16x128xf32>,
    return
  }
  func.func @transform_0(%arg0: i32) -> (i32, i32) {
    %c0_i32 = arith.constant 0 : i32
    %c0_i32_0 = arith.constant 0 : i32
    return %arg0, %c0_i32 : i32, i32
  }
  func.func @transform_1(%arg0: i32) -> (i32, i32) {
    %c0_i32 = arith.constant 0 : i32
    %c0_i32_0 = arith.constant 0 : i32
    return %arg0, %c0_i32 : i32, i32
  }
  func.func @transform_2(%arg0: i32) -> (i32, i32) {
    %c0_i32 = arith.constant 0 : i32
    %c0_i32_0 = arith.constant 0 : i32
    %c0_i32_1 = arith.constant 0 : i32
    return %c0_i32, %c0_i32_0 : i32, i32
  }
  func.func @transform_3(%arg0: i32) -> (i32, i32) {
    %c0_i32 = arith.constant 0 : i32
    %c0_i32_0 = arith.constant 0 : i32
    %c0_i32_1 = arith.constant 0 : i32
    return %c0_i32, %c0_i32_0 : i32, i32
  }
  func.func @transform_4(%arg0: i32) -> (i32, i32) {
    %c0_i32 = arith.constant 0 : i32
    %c0_i32_0 = arith.constant 0 : i32
    return %arg0, %c0_i32 : i32, i32
  }
}

</mosaic_0001>

<bundles_post_ra>
// kernel: dendro_matrix_nn_forward.1
= control target key start
LH: loop header
LB: loop body
LE: loop exit
PB: predicated region body
PF: predicated region fallthrough
CT: control target
= control target key end

     0   :  { %9 = vsyncpa [#allocation3], 0  ;;  %s1434_s15 = smov [#allocation2]   ;;  %s1698_s0 = inlined_call_operand.vmem [shape: bf16[16,16], index: 0, kind: input, shape index: {}]   ;;  %s1699_s1 = inlined_call_operand.vmem [shape: f32[16,8], index: 1, kind: input, shape index: {}]   ;;  %s1700_s2 = inlined_call_operand.hbm [shape: bf16[144,128], index: 2, kind: input, shape index: {}]   ;;  %s1701_s3 = inlined_call_operand.vmem [shape: bf16[288,128], index: 3, kind: input, shape index: {}]   ;;  %s1702_s4 = inlined_call_operand.vmem [shape: f32[16,128], index: 4, kind: output, shape index: {}]  }
   0x1   :  { %s19_s16 = sshll.u32 %s1434_s15, 4  ;;  %s1410_s19 = scalar_lea.hbm %s1700_s2, 1152  ;;  %s20_s16 = int_to_ptr.vmem [resolvable:$true] %s19_s16 }
   0x2   :  { %p1411_p0 = scmp.ne.s32.totalorder %s1700_s2, %s1410_s19  ;;  %p1414_p1 = scmp.lt.u32.totalorder %s1410_s19, %s1700_s2 }
   0x4   :  { %p1416_p2 = pnand %p1414_p1, %p1411_p0 }
   0x6   :  { %1419 = shalt.err (!%p1416_p2)
}
   0x7   :  { %s1420_s24 = scalar_lea.vmem %s20_s16, 1152  ;;  %p1425_p4 = scmp.lt.s32.totalorder %s20_s16, %s20_s16 }
   0x8   :  { %p1421_p3 = scmp.ne.s32.totalorder %s20_s16, %s1420_s24  ;;  %p1426_p5 = scmp.lt.s32.totalorder %s1420_s24, %s1420_s24 }
   0xa   :  { %p1427_p6 = por %p1426_p5, %p1425_p4 }
   0xc   :  { %p1428_p7 = pnand %p1427_p6, %p1421_p3 }
   0xe   :  { %1431 = shalt.err (!%p1428_p7)
}
   0xf   :  { %s1435_s25 = smov 64   ;;  %s1436_s26 = smov 4  }
  0x10   :  { %25 = dma.hbm_to_vmem [thread:$0]  %s1700_s2, 1152, %s20_s16, [#allocation3], %s1435_s25, %s1435_s25, %s1436_s26  }
  0x11   :  { %1432 = dma.done.wait [#allocation3], 1152  }
  0x12   :  { %1433 = vsyncadd [#allocation3], 4294966144  ;;  %v1437_v0 = vmov 0.0   ;;  %vm1438_vm0 = vmmov 0   ;;  %v1439_v1 = vmov 1   ;;  %v1440_v2 = vmov 0  }
  0x13   :  { %1230 = vmatprep.subr.bf16.mxu0 %v1437_v0  ;;  %1236 = vmatprep.subr.bf16.mxu1 %v1437_v0  ;;  %v1382_v3 = vld [vmem:[#allocation2 + $0x8] sm:$0xff]   ;;  %v1383_v4 = vld [vmem:[#allocation2] sm:$0xff]   ;;  %vm51_vm1 = vcmask 130048   ;;  %v1385_v6 = vld [vmem:[#allocation2 + $0x10] sm:$0xff]   ;;  %v1441_v14 = vmov 2   ;;  %v1442_v16 = vmov 3  }
  0x14   :  { %1232 = vmatprep.mubr.msk.bf16.mxu0 %vm1438_vm0, %v1437_v0  ;;  %1238 = vmatprep.mubr.msk.bf16.mxu1 %vm1438_vm0, %v1437_v0  ;;  %v1384_v5 = vld [vmem:[%s1698_s0] sm:$0xff]   ;;  %v1386_v7 = vld [vmem:[#allocation2 + $0x18] sm:$0xff]   ;;  %v1388_v9 = vld [vmem:[#allocation2 + $0x28] sm:$0xff]   ;;  %v1443_v17 = vmov 4   ;;  %v1444_v18 = vmov 5   ;;  %v1445_v19 = vmov 6  }
  0x15   :  { %1370 = vset.pattern.permute.xlu1 %v1439_v1  ;;  %1369 = vset.pattern.permute.xlu0 %v1440_v2  ;;  %v1387_v8 = vld [vmem:[#allocation2 + $0x20] sm:$0xff]   ;;  %v35_v11 = vld [vmem:[%s1699_s1 + $0x8] sm:$0xff]  ;;  %v1389_v12 = vld [vmem:[#allocation2 + $0x30] sm:$0xff]   ;;  %v1446_v20 = vmov 7   ;;  %vm605_vm2 = vcmask 261120  }
  0x16   :  { %1231 = vmatpush3.bf16.msra.mxu0 %v1382_v3  ;;  %1237 = vmatpush3.bf16.msra.mxu1 %v1383_v4  ;;  %v34_v10 = vld [vmem:[%s1699_s1] sm:$0xff]  ;;  %v1390_v13 = vld [vmem:[#allocation2 + $0x38] sm:$0xff]   ;;  %v1392_v21 = vld [vmem:[%s1701_s3 + $0x10] sm:$0xff]  }
  0x17   :  { %1242 = vmatprep.subr.bf16.mxu0 %v1437_v0  ;;  %1248 = vmatprep.subr.bf16.mxu1 %v1437_v0  ;;  %v1391_v15 = vld [vmem:[#allocation2 + $0x40] sm:$0xff]   ;;  %v1394_v23 = vld [vmem:[%s1701_s3 + $0x18] sm:$0xff]   ;;  %v1395_v24 = vld [vmem:[%s1701_s3 + $0x8] sm:$0xff]  }
  0x18   :  { %205 = vperm.xlu1 %1370, %v34_v10   ;;  %98 = vperm.xlu0 %1369, %v34_v10   ;;  %v1393_v22 = vld [vmem:[%s1701_s3] sm:$0xff]  }
  0x19   :  { %1233 = vmatmul.mubr.msk.bf16.vlgmr.msra.gmra.mrb[0].mxu0 %vm51_vm1, %v1384_v5  ;;  %1239 = vmatmul.mubr.msk.bf16.vlgmr.msra.gmra.mrb[0].mxu1 %vm51_vm1, %v1384_v5 }
  0x1a   :  { %1243 = vmatpush3.bf16.msra.mxu0 %v1385_v6  ;;  %1249 = vmatpush3.bf16.msra.mxu1 %v1386_v7 }
  0x1b   :  { %1244 = vmatprep.mubr.msk.bf16.mxu0 %vm1438_vm0, %v1437_v0  ;;  %1250 = vmatprep.mubr.msk.bf16.mxu1 %vm1438_vm0, %v1437_v0 }
  0x1c   :  { %1254 = vmatprep.subr.bf16.mxu0 %v1437_v0  ;;  %1260 = vmatprep.subr.bf16.mxu1 %v1437_v0 }
  0x1d   :  { %209 = vperm.xlu1 %1370, %v35_v11   ;;  %103 = vperm.xlu0 %1369, %v35_v11  }
  0x21   :  { %1245 = vmatmul.mubr.msk.bf16.vlgmr.msra.gmra.mrb[4].mxu0 %vm51_vm1, %v1384_v5  ;;  %1251 = vmatmul.mubr.msk.bf16.vlgmr.msra.gmra.mrb[4].mxu1 %vm51_vm1, %v1384_v5 }
  0x22   :  { %1255 = vmatpush3.bf16.msra.mxu0 %v1387_v8  ;;  %1261 = vmatpush3.bf16.msra.mxu1 %v1388_v9 }
  0x23   :  { %1256 = vmatprep.mubr.msk.bf16.mxu0 %vm1438_vm0, %v1437_v0  ;;  %1262 = vmatprep.mubr.msk.bf16.mxu1 %vm1438_vm0, %v1437_v0 }
  0x24   :  { %1266 = vmatprep.subr.bf16.mxu0 %v1437_v0  ;;  %1272 = vmatprep.subr.bf16.mxu1 %v1437_v0 }
  0x25   :  { %1372 = vset.pattern.permute.xlu1 %v1441_v14  ;;  %1371 = vset.pattern.permute.xlu0 %v1441_v14 }
  0x26   :  { %270 = vperm.xlu1 %1372, %v35_v11   ;;  %266 = vperm.xlu0 %1371, %v34_v10  }
  0x29   :  { %1257 = vmatmul.mubr.msk.bf16.vlgmr.msra.gmra.mrb[8].mxu0 %vm51_vm1, %v1384_v5  ;;  %1263 = vmatmul.mubr.msk.bf16.vlgmr.msra.gmra.mrb[8].mxu1 %vm51_vm1, %v1384_v5 }
  0x2a   :  { %1267 = vmatpush3.bf16.msra.mxu0 %v1389_v12  ;;  %1268 = vmatprep.mubr.msk.bf16.mxu0 %vm1438_vm0, %v1437_v0 }
  0x2b   :  { %1273 = vmatpush3.bf16.msra.mxu1 %v1390_v13  ;;  %1278 = vmatprep.subr.bf16.mxu0 %v1437_v0 }
  0x2c   :  { %1274 = vmatprep.mubr.msk.bf16.mxu1 %vm1438_vm0, %v1437_v0  ;;  %1284 = vmatprep.subr.bf16.mxu1 %v1437_v0 }
  0x2d   :  { %1373 = vset.pattern.permute.xlu1 %v1442_v16  ;;  %1374 = vset.pattern.permute.xlu0 %v1442_v16 }
  0x2e   :  { %327 = vperm.xlu1 %1373, %v34_v10   ;;  %331 = vperm.xlu0 %1374, %v35_v11  }
  0x31   :  { %1269 = vmatmul.mubr.msk.bf16.vlgmr.msra.gmra.mrb[12].mxu0 %vm51_vm1, %v1384_v5  ;;  %1275 = vmatmul.mubr.msk.bf16.vlgmr.msra.gmra.mrb[12].mxu1 %vm51_vm1, %v1384_v5 }
  0x32   :  { %1279 = vmatpush3.bf16.msra.mxu0 %v1391_v15  ;;  %1280 = vmatprep.mubr.msk.bf16.mxu0 %vm1438_vm0, %v1437_v0 }
  0x33   :  { %1292 = vmatprep.subr.bf16.mxu0 %v1437_v0  ;;  %1288 = vmatprep.mubr.msk.bf16.mxu1 %vm1438_vm0, %v1437_v0 }
  0x34   :  { %1375 = vset.pattern.permute.xlu1 %v1443_v17  ;;  %1376 = vset.pattern.permute.xlu0 %v1444_v18 }
  0x35   :  { %388 = vperm.xlu1 %1375, %v34_v10   ;;  %449 = vperm.xlu0 %1376, %v34_v10  }
  0x36   :  { %1285 = vmatpush3.bf16.msra.mxu1 %v1392_v21 }
  0x37   :  { %1286 = vmatprep.subr.bf16.mxu1 %v1437_v0 }
  0x39   :  { %1281 = vmatmul.mubr.msk.bf16.vlgmr.msra.gmra.mrb[16].mxu0 %vm51_vm1, %v1384_v5  ;;  %392 = vperm.xlu1 %1375, %v35_v11  }
  0x3a   :  { %1296 = vmatprep.mubr.msk.bf16.mxu0 %vm1438_vm0, %v1437_v0  ;;  %1379 = vset.pattern.permute.xlu0 %v1445_v19 }
  0x3b   :  { %514 = vperm.xlu0 %1379, %v35_v11   ;;  %1293 = vmatpush3.bf16.msra.mxu0 %v1393_v22 }
  0x3c   :  { %1294 = vmatprep.subr.bf16.mxu0 %v1437_v0  ;;  %1287 = vmatpush3.bf16.msra.mxu1 %v1394_v23 }
  0x3d   :  { %1377 = vset.pattern.permute.xlu1 %v1444_v18  ;;  %1300 = vmatprep.subr.bf16.mxu1 %v1437_v0 }
  0x3e   :  { %453 = vperm.xlu1 %1377, %v35_v11  }
  0x3f   :  { %1381 = vset.pattern.permute.xlu0 %v1446_v20  ;;  %1295 = vmatpush3.bf16.msra.mxu0 %v1395_v24 }
  0x40   :  { %1308 = vmatprep.subr.bf16.mxu0 %v1437_v0 }
  0x42   :  { %1378 = vset.pattern.permute.xlu1 %v1445_v19 }
  0x43   :  { %510 = vperm.xlu1 %1378, %v34_v10  }
  0x47   :  { %1380 = vset.pattern.permute.xlu1 %v1446_v20 }
  0x48   :  { %571 = vperm.xlu1 %1380, %v34_v10  }
  0x4c   :  { %575 = vperm.xlu1 %1380, %v35_v11  }
  0x97   :  { %v1551_v25 = vpop.permute.xlu1 %205  ;;  %v1555_v27 = vpop.permute.xlu0 %98 }
  0x9c   :  { %v1553_v26 = vpop.permute.xlu1 %209  ;;  %v1559_v29 = vpop.permute.xlu0 %103 }
  0xa5   :  { %v1557_v28 = vpop.permute.xlu1 %270  ;;  %v1565_v42 = vpop.permute.xlu0 %266 }
  0xad   :  { %v1561_v31 = vpop.permute.xlu1 %327  ;;  %v1569_v46 = vpop.permute.xlu0 %331 }
  0xb4   :  { %v1567_v44 = vpop.permute.xlu1 %388  ;;  %v1577_v63 = vpop.permute.xlu0 %449 }
  0xb8   :  { %v1574_v57 = vpop.permute.xlu1 %392 }
  0xba   :  { %v1587_v20 = vpop.permute.xlu0 %514 }
  0xbd   :  { %v1579_v2 = vpop.permute.xlu1 %453 }
  0xc2   :  { %v1585_v17 = vpop.permute.xlu1 %510 }
  0xec   :  { %v89_v30 = vpop.f32.mrb[0].mxu0  ;;  %v148_v34 = vpop.f32.mrb[0].mxu1 }
  0xed   :  { %v106_v32 = vmul.f32 %v1555_v27, %v89_v30  ;;  %v1234_v33 = vpop.f32.mrb[1].mxu0  ;;  %v1240_v36 = vpop.f32.mrb[1].mxu1 }
  0xee   :  { %v92_v35 = vpop.f32.mrb[2].mxu0  ;;  %v151_v40 = vpop.f32.mrb[2].mxu1 }
  0xef   :  { %v107_v37 = vmul.f32 %v1559_v29, %v92_v35  ;;  %v149_v38 = vadd.f32 %v148_v34, %v106_v32  ;;  %v1235_v39 = vpop.f32.mrb[3].mxu0  ;;  %v1241_v41 = vpop.f32.mrb[3].mxu1 }
  0xf1   :  { %v152_v43 = vadd.f32 %v151_v40, %v107_v37  ;;  %v1592_v37 = vpop.permute.xlu1 %571 }
  0xf4   :  { %v197_v45 = vpop.f32.mrb[4].mxu0  ;;  %v258_v48 = vpop.f32.mrb[4].mxu1 }
  0xf5   :  { %v212_v47 = vmul.f32 %v1551_v25, %v197_v45  ;;  %v1246_v49 = vpop.f32.mrb[5].mxu0  ;;  %v1252_v50 = vpop.f32.mrb[5].mxu1  ;;  %v273_v51 = vmul.f32 %v1565_v42, %v258_v48 }
  0xf6   :  { %v200_v52 = vpop.f32.mrb[6].mxu0  ;;  %v261_v55 = vpop.f32.mrb[6].mxu1 }
  0xf7   :  { %v214_v53 = vadd.f32 %v212_v47, %v149_v38  ;;  %v213_v54 = vmul.f32 %v1553_v26, %v200_v52  ;;  %v1247_v56 = vpop.f32.mrb[7].mxu0  ;;  %v1253_v58 = vpop.f32.mrb[7].mxu1  ;;  %v274_v61 = vmul.f32 %v1557_v28, %v261_v55 }
  0xf8   :  { %v1596_v49 = vpop.permute.xlu1 %575  ;;  %v1396_v58 = vld [vmem:[%s1701_s3 + $0x20] sm:$0xff]  }
  0xf9   :  { %v275_v59 = vadd.f32 %v273_v51, %v214_v53  ;;  %v215_v60 = vadd.f32 %v213_v54, %v152_v43 }
  0xfb   :  { %v276_v62 = vadd.f32 %v274_v61, %v215_v60  ;;  %v1398_v61 = vld [vmem:[%s1701_s3 + $0x28] sm:$0xff]  }
  0xfc   :  { %v319_v1 = vpop.f32.mrb[8].mxu0  ;;  %v380_v4 = vpop.f32.mrb[8].mxu1 }
  0xfd   :  { %v334_v3 = vmul.f32 %v1561_v31, %v319_v1  ;;  %v1258_v5 = vpop.f32.mrb[9].mxu0  ;;  %v1264_v6 = vpop.f32.mrb[9].mxu1  ;;  %v395_v9 = vmul.f32 %v1567_v44, %v380_v4  ;;  %v1400_v1 = vld [vmem:[%s1701_s3 + $0x40] sm:$0xff]   ;;  %v1402_v4 = vld [vmem:[%s1701_s3 + $0x48] sm:$0xff]  }
  0xfe   :  { %v322_v7 = vpop.f32.mrb[10].mxu0  ;;  %v383_v11 = vpop.f32.mrb[10].mxu1  ;;  %v1403_v5 = vld [vmem:[%s1701_s3 + $0x58] sm:$0xff]   ;;  %v1404_v6 = vld [vmem:[%s1701_s3 + $0x60] sm:$0xff]  }
  0xff   :  { %v336_v8 = vadd.f32 %v334_v3, %v275_v59  ;;  %v335_v10 = vmul.f32 %v1569_v46, %v322_v7  ;;  %v1259_v12 = vpop.f32.mrb[11].mxu0  ;;  %v1265_v13 = vpop.f32.mrb[11].mxu1  ;;  %v396_v16 = vmul.f32 %v1574_v57, %v383_v11  ;;  %v1397_v59 = vld [vmem:[%s1701_s3 + $0x30] sm:$0xff]   ;;  %v1409_v11 = vld [vmem:[%s1701_s3 + $0x88] sm:$0xff]  }
 0x100   :  { %v1401_v3 = vld [vmem:[%s1701_s3 + $0x50] sm:$0xff]  }
 0x101   :  { %v397_v14 = vadd.f32 %v395_v9, %v336_v8  ;;  %v337_v15 = vadd.f32 %v335_v10, %v276_v62  ;;  %v1399_v62 = vld [vmem:[%s1701_s3 + $0x38] sm:$0xff]   ;;  %v1405_v7 = vld [vmem:[%s1701_s3 + $0x70] sm:$0xff]   ;;  %v1406_v8 = vld [vmem:[%s1701_s3 + $0x68] sm:$0xff]  }
 0x102   :  { %v1407_v9 = vld [vmem:[%s1701_s3 + $0x78] sm:$0xff]   ;;  %v1408_v10 = vld [vmem:[%s1701_s3 + $0x80] sm:$0xff]  }
 0x103   :  { %v398_v18 = vadd.f32 %v396_v16, %v337_v15 }
 0x104   :  { %v441_v19 = vpop.f32.mrb[12].mxu0  ;;  %v502_v23 = vpop.f32.mrb[12].mxu1 }
 0x105   :  { %v456_v21 = vmul.f32 %v1577_v63, %v441_v19  ;;  %v1270_v22 = vpop.f32.mrb[13].mxu0  ;;  %v517_v30 = vmul.f32 %v1585_v17, %v502_v23  ;;  %v1276_v32 = vpop.f32.mrb[13].mxu1 }
 0x106   :  { %v444_v24 = vpop.f32.mrb[14].mxu0  ;;  %v505_v36 = vpop.f32.mrb[14].mxu1 }
 0x107   :  { %v458_v33 = vadd.f32 %v456_v21, %v397_v14  ;;  %v457_v34 = vmul.f32 %v1579_v2, %v444_v24  ;;  %v1271_v35 = vpop.f32.mrb[15].mxu0  ;;  %v518_v38 = vmul.f32 %v1587_v20, %v505_v36  ;;  %v1277_v39 = vpop.f32.mrb[15].mxu1 }
 0x109   :  { %v459_v40 = vadd.f32 %v457_v34, %v398_v18  ;;  %v519_v41 = vadd.f32 %v517_v30, %v458_v33 }
 0x10b   :  { %v520_v43 = vadd.f32 %v518_v38, %v459_v40 }
 0x10c   :  { %v563_v45 = vpop.f32.mrb[16].mxu0 }
 0x10d   :  { %v578_v47 = vmul.f32 %v1592_v37, %v563_v45  ;;  %v1282_v48 = vpop.f32.mrb[17].mxu0 }
 0x10e   :  { %v566_v50 = vpop.f32.mrb[18].mxu0 }
 0x10f   :  { %v580_v51 = vadd.f32 %v578_v47, %v519_v41  ;;  %v579_v52 = vmul.f32 %v1596_v49, %v566_v50  ;;  %v1283_v53 = vpop.f32.mrb[19].mxu0 }
 0x111   :  { %v581_v54 = vadd.f32 %v579_v52, %v520_v43  ;;  %v582_v55 = vmax.f32 %v580_v51, 0.0 }
 0x113   :  { %v583_v56 = vmax.f32 %v581_v54, 0.0 }
 0x115   :  { %v584_v60 = vpack.c.bf16 %v583_v56, %v582_v55 }
 0x117   :  { %1289 = vmatmul.mubr.msk.bf16.vlgmr.msra.gmra.mrb[16].mxu1 %vm605_vm2, %v584_v60  ;;  %1297 = vmatmul.mubr.msk.bf16.vlgmr.msra.gmra.mrb[20].mxu0 %vm605_vm2, %v584_v60 }
 0x118   :  { %1301 = vmatpush3.bf16.msra.mxu1 %v1396_v58  ;;  %1309 = vmatpush3.bf16.msra.mxu0 %v1397_v59 }
 0x119   :  { %1302 = vmatprep.subr.bf16.mxu1 %v1437_v0  ;;  %1310 = vmatprep.subr.bf16.mxu0 %v1437_v0 }
 0x11a   :  { %1304 = vmatprep.mubr.msk.bf16.mxu1 %vm1438_vm0, %v1437_v0  ;;  %1312 = vmatprep.mubr.msk.bf16.mxu0 %vm1438_vm0, %v1437_v0 }
 0x11c   :  { %1303 = vmatpush3.bf16.msra.mxu1 %v1398_v61  ;;  %1311 = vmatpush3.bf16.msra.mxu0 %v1399_v62 }
 0x11d   :  { %1316 = vmatprep.subr.bf16.mxu1 %v1437_v0  ;;  %1324 = vmatprep.subr.bf16.mxu0 %v1437_v0 }
 0x11f   :  { %1305 = vmatmul.mubr.msk.bf16.vlgmr.msra.gmra.mrb[20].mxu1 %vm605_vm2, %v584_v60  ;;  %1313 = vmatmul.mubr.msk.bf16.vlgmr.msra.gmra.mrb[24].mxu0 %vm605_vm2, %v584_v60 }
 0x120   :  { %1317 = vmatpush3.bf16.msra.mxu1 %v1400_v1  ;;  %1325 = vmatpush3.bf16.msra.mxu0 %v1401_v3 }
 0x121   :  { %1318 = vmatprep.subr.bf16.mxu1 %v1437_v0  ;;  %1326 = vmatprep.subr.bf16.mxu0 %v1437_v0 }
 0x122   :  { %1320 = vmatprep.mubr.msk.bf16.mxu1 %vm1438_vm0, %v1437_v0  ;;  %1328 = vmatprep.mubr.msk.bf16.mxu0 %vm1438_vm0, %v1437_v0 }
 0x124   :  { %1319 = vmatpush3.bf16.msra.mxu1 %v1402_v4  ;;  %1327 = vmatpush3.bf16.msra.mxu0 %v1403_v5 }
 0x125   :  { %1332 = vmatprep.subr.bf16.mxu1 %v1437_v0  ;;  %1340 = vmatprep.subr.bf16.mxu0 %v1437_v0 }
 0x127   :  { %1321 = vmatmul.mubr.msk.bf16.vlgmr.msra.gmra.mrb[24].mxu1 %vm605_vm2, %v584_v60  ;;  %1329 = vmatmul.mubr.msk.bf16.vlgmr.msra.gmra.mrb[28].mxu0 %vm605_vm2, %v584_v60 }
 0x128   :  { %1333 = vmatpush3.bf16.msra.mxu1 %v1404_v6  ;;  %1341 = vmatpush3.bf16.msra.mxu0 %v1405_v7 }
 0x129   :  { %1334 = vmatprep.subr.bf16.mxu1 %v1437_v0  ;;  %1342 = vmatprep.subr.bf16.mxu0 %v1437_v0 }
 0x12a   :  { %1336 = vmatprep.mubr.msk.bf16.mxu1 %vm1438_vm0, %v1437_v0  ;;  %1344 = vmatprep.mubr.msk.bf16.mxu0 %vm1438_vm0, %v1437_v0 }
 0x12c   :  { %1335 = vmatpush3.bf16.msra.mxu1 %v1406_v8  ;;  %1343 = vmatpush3.bf16.msra.mxu0 %v1407_v9 }
 0x12d   :  { %1348 = vmatprep.subr.bf16.mxu1 %v1437_v0 }
 0x12f   :  { %1337 = vmatmul.mubr.msk.bf16.vlgmr.msra.gmra.mrb[28].mxu1 %vm605_vm2, %v584_v60  ;;  %1345 = vmatmul.mubr.msk.bf16.vlgmr.msra.gmra.mrb[32].mxu0 %vm605_vm2, %v584_v60 }
 0x130   :  { %1349 = vmatpush3.bf16.msra.mxu1 %v1408_v10  ;;  %1352 = vmatprep.mubr.msk.bf16.mxu1 %vm1438_vm0, %v1437_v0 }
 0x131   :  { %1350 = vmatprep.subr.bf16.mxu1 %v1437_v0 }
 0x134   :  { %1351 = vmatpush3.bf16.msra.mxu1 %v1409_v11 }
 0x137   :  { %1353 = vmatmul.mubr.msk.bf16.vlgmr.msra.gmra.mrb[32].mxu1 %vm605_vm2, %v584_v60 }
 0x1ea   :  { %v643_v12 = vpop.f32.mrb[16].mxu1  ;;  %v698_v13 = vpop.f32.mrb[20].mxu0 }
 0x1eb   :  { %v650_v14 = vmul.f32 %v643_v12, %v1555_v27  ;;  %v1290_v15 = vpop.f32.mrb[17].mxu1  ;;  %v1298_v16 = vpop.f32.mrb[21].mxu0 }
 0x1ec   :  { %v646_v18 = vpop.f32.mrb[18].mxu1  ;;  %v701_v19 = vpop.f32.mrb[22].mxu0 }
 0x1ed   :  { %v699_v21 = vadd.f32 %v698_v13, %v650_v14  ;;  %v651_v22 = vmul.f32 %v646_v18, %v1559_v29  ;;  %v1291_v23 = vpop.f32.mrb[19].mxu1  ;;  %v1299_v24 = vpop.f32.mrb[23].mxu0 }
 0x1ef   :  { %v702_v30 = vadd.f32 %v701_v19, %v651_v22 }
 0x1f2   :  { %v755_v32 = vpop.f32.mrb[20].mxu1  ;;  %v816_v33 = vpop.f32.mrb[24].mxu0 }
 0x1f3   :  { %v762_v0 = vmul.f32 %v755_v32, %v1551_v25  ;;  %v1306_v34 = vpop.f32.mrb[21].mxu1  ;;  %v1314_v35 = vpop.f32.mrb[25].mxu0  ;;  %v823_v27 = vmul.f32 %v816_v33, %v1565_v42 }
 0x1f4   :  { %v758_v36 = vpop.f32.mrb[22].mxu1  ;;  %v819_v38 = vpop.f32.mrb[26].mxu0 }
 0x1f5   :  { %v764_v39 = vadd.f32 %v762_v0, %v699_v21  ;;  %v763_v40 = vmul.f32 %v758_v36, %v1553_v26  ;;  %v1307_v41 = vpop.f32.mrb[23].mxu1  ;;  %v1315_v43 = vpop.f32.mrb[27].mxu0  ;;  %v824_v47 = vmul.f32 %v819_v38, %v1557_v28 }
 0x1f7   :  { %v825_v45 = vadd.f32 %v823_v27, %v764_v39  ;;  %v765_v29 = vadd.f32 %v763_v40, %v702_v30 }
 0x1f9   :  { %v826_v48 = vadd.f32 %v824_v47, %v765_v29 }
 0x1fa   :  { %v877_v50 = vpop.f32.mrb[24].mxu1  ;;  %v938_v51 = vpop.f32.mrb[28].mxu0 }
 0x1fb   :  { %v884_v25 = vmul.f32 %v877_v50, %v1561_v31  ;;  %v1322_v52 = vpop.f32.mrb[25].mxu1  ;;  %v1330_v53 = vpop.f32.mrb[29].mxu0  ;;  %v945_v42 = vmul.f32 %v938_v51, %v1567_v44 }
 0x1fc   :  { %v880_v54 = vpop.f32.mrb[26].mxu1  ;;  %v941_v55 = vpop.f32.mrb[30].mxu0 }
 0x1fd   :  { %v886_v56 = vadd.f32 %v884_v25, %v825_v45  ;;  %v885_v26 = vmul.f32 %v880_v54, %v1569_v46  ;;  %v1323_v58 = vpop.f32.mrb[27].mxu1  ;;  %v1331_v59 = vpop.f32.mrb[31].mxu0  ;;  %v946_v28 = vmul.f32 %v941_v55, %v1574_v57 }
 0x1ff   :  { %v947_v60 = vadd.f32 %v945_v42, %v886_v56  ;;  %v887_v61 = vadd.f32 %v885_v26, %v826_v48 }
 0x201   :  { %v948_v62 = vadd.f32 %v946_v28, %v887_v61 }
 0x202   :  { %v999_v1 = vpop.f32.mrb[28].mxu1  ;;  %v1060_v3 = vpop.f32.mrb[32].mxu0 }
 0x203   :  { %v1006_v31 = vmul.f32 %v999_v1, %v1577_v63  ;;  %v1338_v4 = vpop.f32.mrb[29].mxu1  ;;  %v1346_v5 = vpop.f32.mrb[33].mxu0  ;;  %v1067_v44 = vmul.f32 %v1060_v3, %v1585_v17 }
 0x204   :  { %v1002_v6 = vpop.f32.mrb[30].mxu1  ;;  %v1063_v7 = vpop.f32.mrb[34].mxu0 }
 0x205   :  { %v1008_v8 = vadd.f32 %v1006_v31, %v947_v60  ;;  %v1007_v46 = vmul.f32 %v1002_v6, %v1579_v2  ;;  %v1339_v9 = vpop.f32.mrb[31].mxu1  ;;  %v1347_v10 = vpop.f32.mrb[35].mxu0  ;;  %v1068_v57 = vmul.f32 %v1063_v7, %v1587_v20 }
 0x207   :  { %v1069_v11 = vadd.f32 %v1067_v44, %v1008_v8  ;;  %v1009_v12 = vadd.f32 %v1007_v46, %v948_v62 }
 0x209   :  { %v1070_v13 = vadd.f32 %v1068_v57, %v1009_v12 }
 0x20a   :  { %v1121_v14 = vpop.f32.mrb[32].mxu1 }
 0x20b   :  { %v1128_v15 = vmul.f32 %v1121_v14, %v1592_v37  ;;  %v1354_v63 = vpop.f32.mrb[33].mxu1 }
 0x20c   :  { %v1124_v16 = vpop.f32.mrb[34].mxu1 }
 0x20d   :  { %v1130_v18 = vadd.f32 %v1128_v15, %v1069_v11  ;;  %v1129_v19 = vmul.f32 %v1124_v16, %v1596_v49  ;;  %v1355_v21 = vpop.f32.mrb[35].mxu1 }
 0x20f   :  { %1132 = vst [vmem:[%s1702_s4] sm:$0xff] %v1130_v18  ;;  %v1131_v2 = vadd.f32 %v1129_v19, %v1070_v13 }
 0x211   :  { %1133 = vst [vmem:[%s1702_s4 + $0x8] sm:$0xff] %v1131_v2 }
 0x212   :  { %1138 = vsyncpa [#allocation3], 1 }

</bundles_post_ra>
